<compile_context>
chip_gen: v6e
topology: v6e:2x2x1
jax: 0.10.0
libtpu: 0.0.40
codegen_flags: <defaults>
</compile_context>

<pallas_src>
import functools

import jax
import jax.numpy as jnp
from jax import lax
from jax.experimental import pallas as pl
from jax.experimental.pallas import tpu as pltpu


_UNROLL_T = 32  # fully unroll the recurrence only for short sequences


def _sigmoid(x):
    # sigmoid(x) = 0.5 * (1 + tanh(x / 2)) : single EUP tanh instead of exp+recip.
    return 0.5 * jnp.tanh(0.5 * x) + 0.5


def lstm_kernel(xw_ref, whh_ref, h0_ref, c0_ref, out_ref, h_out_ref, c_out_ref):
    """Serial LSTM recurrence.

    xw_ref : (B, T, 4H)  precomputed x @ W_ih^T + (b_ih + b_hh)
    whh_ref: (H, 4H)     W_hh^T
    out_ref: (B, T*H)    lane-dense flattened hidden states
    """
    B, T, H4 = xw_ref.shape
    H = H4 // 4

    w = whh_ref[...]                      # resident for the whole recurrence
    h = h0_ref[...].astype(jnp.float32)   # carried in registers
    c = c0_ref[...].astype(jnp.float32)

    def cell(h_prev, c_prev, xw_t):
        # gates = h_{t-1} @ W_hh^T + (x_t @ W_ih^T + b)   -- only the H-contraction
        gates = jnp.dot(h_prev, w, preferred_element_type=jnp.float32) + xw_t
        i_g = _sigmoid(gates[:, 0 * H:1 * H])
        f_g = _sigmoid(gates[:, 1 * H:2 * H])
        g_g = jnp.tanh(gates[:, 2 * H:3 * H])
        o_g = _sigmoid(gates[:, 3 * H:4 * H])
        c_new = f_g * c_prev + i_g * g_g
        h_new = o_g * jnp.tanh(c_new)
        return h_new, c_new

    if T <= _UNROLL_T:
        # Fully unrolled; collect hidden states and emit ONE lane-dense store.
        hs = []
        for t in range(T):
            h, c = cell(h, c, xw_ref[:, t, :])
            hs.append(h)
        out_ref[...] = jnp.concatenate(hs, axis=1).astype(out_ref.dtype)
    else:
        # Long sequences: non-unrolled loop, register carry, per-step store.
        def step(t, carry):
            h_prev, c_prev = carry
            xw_t = xw_ref[:, pl.ds(t, 1), :][:, 0, :]
            h_new, c_new = cell(h_prev, c_prev, xw_t)
            out_ref[:, pl.ds(t * H, H)] = h_new.astype(out_ref.dtype)
            return (h_new, c_new)

        h, c = lax.fori_loop(0, T, step, (h, c))

    h_out_ref[...] = h.astype(h_out_ref.dtype)
    c_out_ref[...] = c.astype(c_out_ref.dtype)


@functools.partial(jax.jit)
def _encoder_forward(inputs, w_ih, w_hh, b_ih, b_hh, h0, c0):
    B, T, D = inputs.shape
    H = w_hh.shape[1]

    x32 = inputs.astype(jnp.float32)
    bias = (b_ih + b_hh).astype(jnp.float32)

    # One large, MXU-friendly GEMM over the whole sequence (outside the kernel).
    xw = (x32.reshape(B * T, D) @ jnp.transpose(w_ih).astype(jnp.float32)
          + bias).reshape(B, T, 4 * H)
    whh_t = jnp.transpose(w_hh).astype(jnp.float32)              # (H, 4H)

    # VMEM budget / cost hints (everything is whole-array VMEM resident here).
    f32 = 4
    vmem_need = f32 * (B * T * 4 * H + H * 4 * H + B * T * H + 4 * B * H)
    vmem_limit = int(min(64 * 1024 * 1024, max(32 * 1024 * 1024, 4 * vmem_need)))
    cost = pl.CostEstimate(
        flops=2 * B * T * H * 4 * H + 10 * B * T * H,
        transcendentals=5 * B * T * H,
        bytes_accessed=vmem_need,
    )

    out_flat, h_n, c_n = pl.pallas_call(
        lstm_kernel,
        out_shape=(
            jax.ShapeDtypeStruct((B, T * H), jnp.float32),  # lane-dense hidden slab
            jax.ShapeDtypeStruct((B, H), jnp.float32),      # final h
            jax.ShapeDtypeStruct((B, H), jnp.float32),      # final c
        ),
        in_specs=[
            pl.BlockSpec(memory_space=pltpu.MemorySpace.VMEM),   # xw (B, T, 4H)
            pl.BlockSpec(memory_space=pltpu.MemorySpace.VMEM),   # W_hh^T (H, 4H)
            pl.BlockSpec(memory_space=pltpu.MemorySpace.VMEM),   # h0 (B, H)
            pl.BlockSpec(memory_space=pltpu.MemorySpace.VMEM),   # c0 (B, H)
        ],
        out_specs=(
            pl.BlockSpec(memory_space=pltpu.MemorySpace.VMEM),
            pl.BlockSpec(memory_space=pltpu.MemorySpace.VMEM),
            pl.BlockSpec(memory_space=pltpu.MemorySpace.VMEM),
        ),
        compiler_params=pltpu.CompilerParams(vmem_limit_bytes=vmem_limit),
        cost_estimate=cost,
    )(xw, whh_t, h0, c0)

    out = out_flat.reshape(B, T, H)
    return out, (h_n[None, :, :], c_n[None, :, :])


def encoder_forward(inputs, w_ih, w_hh, b_ih, b_hh, hidden0=None):
    """Matches PyTorch nn.LSTM(batch_first=True) forward.

    inputs: (B, T, D).  Returns (output (B,T,H), (h_n (1,B,H), c_n (1,B,H))).
    """
    B = inputs.shape[0]
    H = w_hh.shape[1]
    if hidden0 is None:
        h0 = jnp.zeros((B, H), jnp.float32)
        c0 = jnp.zeros((B, H), jnp.float32)
    else:
        h0 = jnp.asarray(hidden0[0], jnp.float32).reshape(B, H)
        c0 = jnp.asarray(hidden0[1], jnp.float32).reshape(B, H)
    return _encoder_forward(inputs, w_ih, w_hh, b_ih, b_hh, h0, c0)


def lstm_reference(inputs, w_ih, w_hh, b_ih, b_hh):
    """Pure-JAX reference (lax.scan) matching PyTorch nn.LSTM semantics."""
    B, T, D = inputs.shape
    H = w_hh.shape[1]
    bias = b_ih + b_hh

    def step(carry, x_t):
        h, c = carry
        gates = x_t @ w_ih.T + h @ w_hh.T + bias
        i = jax.nn.sigmoid(gates[:, 0 * H:1 * H])
        f = jax.nn.sigmoid(gates[:, 1 * H:2 * H])
        g = jnp.tanh(gates[:, 2 * H:3 * H])
        o = jax.nn.sigmoid(gates[:, 3 * H:4 * H])
        c_new = f * c + i * g
        h_new = o * jnp.tanh(c_new)
        return (h_new, c_new), h_new

    h0 = jnp.zeros((B, H), jnp.float32)
    c0 = jnp.zeros((B, H), jnp.float32)
    (h_n, c_n), outs = lax.scan(step, (h0, c0), jnp.transpose(inputs, (1, 0, 2)))
    return jnp.transpose(outs, (1, 0, 2)), (h_n[None], c_n[None])


if __name__ == "__main__":
    # Small shapes consistent with the module: batch=2, seq=8, inputDim=4, hiddenDim=32
    B, T, D, H = 2, 8, 4, 32

    key = jax.random.PRNGKey(0)
    k_x, k_wih, k_whh, k_bih, k_bhh = jax.random.split(key, 5)

    # PyTorch LSTM default init: uniform(-1/sqrt(H), 1/sqrt(H))
    bound = 1.0 / (H ** 0.5)
    x = jax.random.normal(k_x, (B, T, D), jnp.float32)
    w_ih = jax.random.uniform(k_wih, (4 * H, D), jnp.float32, -bound, bound)
    w_hh = jax.random.uniform(k_whh, (4 * H, H), jnp.float32, -bound, bound)
    b_ih = jax.random.uniform(k_bih, (4 * H,), jnp.float32, -bound, bound)
    b_hh = jax.random.uniform(k_bhh, (4 * H,), jnp.float32, -bound, bound)

    output, (state, cell) = jax.block_until_ready(
        encoder_forward(x, w_ih, w_hh, b_ih, b_hh))

    ref_out, (ref_state, ref_cell) = lstm_reference(x, w_ih, w_hh, b_ih, b_hh)

    assert output.shape == (B, T, H)
    assert state.shape == (1, B, H) and cell.shape == (1, B, H)
    assert jnp.allclose(output, ref_out, atol=1e-4, rtol=1e-4)
    assert jnp.allclose(state, ref_state, atol=1e-4, rtol=1e-4)
    assert jnp.allclose(cell, ref_cell, atol=1e-4, rtol=1e-4)

    print("KERNEL_OK")
</pallas_src>

<mosaic_0001>
module attributes {stable_mosaic.version = 11 : i64} {
  func.func @lstm_kernel(%arg0: memref<2x8x128xf32, #tpu.memory_space<vmem>>, %arg1: memref<32x128xf32, #tpu.memory_space<vmem>>, %arg2: memref<2x32xf32, #tpu.memory_space<vmem>>, %arg3: memref<2x32xf32, #tpu.memory_space<vmem>>, %arg4: memref<2x256xf32, #tpu.memory_space<vmem>>, %arg5: memref<2x32xf32, #tpu.memory_space<vmem>>, %arg6: memref<2x32xf32, #tpu.memory_space<vmem>>) attributes {dimension_semantics = [], scalar_prefetch = 0 : i64, scratch_operands = 0 : i64, tpu.core_type = #tpu.core_type<tc>} {
    %c0 = arith.constant 0 : index
    %c0_0 = arith.constant 0 : index
    %0 = vector.load %arg1[%c0, %c0_0] : memref<32x128xf32, #tpu.memory_space<vmem>>, vector<32x128xf32>
    %c0_1 = arith.constant 0 : index
    %c0_2 = arith.constant 0 : index
    %1 = vector.load %arg2[%c0_1, %c0_2] : memref<2x32xf32, #tpu.memory_space<vmem>>, vector<2x32xf32>
    %c0_3 = arith.constant 0 : index
    %c0_4 = arith.constant 0 : index
    %2 = vector.load %arg3[%c0_3, %c0_4] : memref<2x32xf32, #tpu.memory_space<vmem>>, vector<2x32xf32>
    %c0_5 = arith.constant 0 : index
    %c0_6 = arith.constant 0 : index
    %c0_7 = arith.constant 0 : index
    %3 = vector.load %arg0[%c0_5, %c0_6, %c0_7] : memref<2x8x128xf32, #tpu.memory_space<vmem>>, vector<2x1x128xf32>
    %4 = vector.shape_cast %3 : vector<2x1x128xf32> to vector<2x128xf32>
    %cst = arith.constant dense<0.000000e+00> : vector<2x128xf32>
    %5 = tpu.matmul %1, %0, %cst {dimension_numbers = #tpu.dot_dimension_numbers<[1], [0], [0], [1], [0, 0, 1, 1], [], []>} : vector<2x32xf32>, vector<32x128xf32>, vector<2x128xf32> -> vector<2x128xf32>
    %6 = arith.addf %5, %4 : vector<2x128xf32>
    %7 = vector.extract_strided_slice %6 {offsets = [0, 0], sizes = [2, 32], strides = [1, 1]} : vector<2x128xf32> to vector<2x32xf32>
    %cst_8 = arith.constant 5.000000e-01 : f32
    %8 = vector.broadcast %cst_8 : f32 to vector<2x32xf32>
    %9 = arith.mulf %8, %7 : vector<2x32xf32>
    %10 = math.tanh %9 : vector<2x32xf32>
    %cst_9 = arith.constant 5.000000e-01 : f32
    %11 = vector.broadcast %cst_9 : f32 to vector<2x32xf32>
    %12 = arith.mulf %11, %10 : vector<2x32xf32>
    %cst_10 = arith.constant 5.000000e-01 : f32
    %13 = vector.broadcast %cst_10 : f32 to vector<2x32xf32>
    %14 = arith.addf %12, %13 : vector<2x32xf32>
    %15 = vector.extract_strided_slice %6 {offsets = [0, 32], sizes = [2, 32], strides = [1, 1]} : vector<2x128xf32> to vector<2x32xf32>
    %cst_11 = arith.constant 5.000000e-01 : f32
    %16 = vector.broadcast %cst_11 : f32 to vector<2x32xf32>
    %17 = arith.mulf %16, %15 : vector<2x32xf32>
    %18 = math.tanh %17 : vector<2x32xf32>
    %cst_12 = arith.constant 5.000000e-01 : f32
    %19 = vector.broadcast %cst_12 : f32 to vector<2x32xf32>
    %20 = arith.mulf %19, %18 : vector<2x32xf32>
    %cst_13 = arith.constant 5.000000e-01 : f32
    %21 = vector.broadcast %cst_13 : f32 to vector<2x32xf32>
    %22 = arith.addf %20, %21 : vector<2x32xf32>
    %23 = vector.extract_strided_slice %6 {offsets = [0, 64], sizes = [2, 32], strides = [1, 1]} : vector<2x128xf32> to vector<2x32xf32>
    %24 = math.tanh %23 : vector<2x32xf32>
    %25 = vector.extract_strided_slice %6 {offsets = [0, 96], sizes = [2, 32], strides = [1, 1]} : vector<2x128xf32> to vector<2x32xf32>
    %cst_14 = arith.constant 5.000000e-01 : f32
    %26 = vector.broadcast %cst_14 : f32 to vector<2x32xf32>
    %27 = arith.mulf %26, %25 : vector<2x32xf32>
    %28 = math.tanh %27 : vector<2x32xf32>
    %cst_15 = arith.constant 5.000000e-01 : f32
    %29 = vector.broadcast %cst_15 : f32 to vector<2x32xf32>
    %30 = arith.mulf %29, %28 : vector<2x32xf32>
    %cst_16 = arith.constant 5.000000e-01 : f32
    %31 = vector.broadcast %cst_16 : f32 to vector<2x32xf32>
    %32 = arith.addf %30, %31 : vector<2x32xf32>
    %33 = arith.mulf %22, %2 : vector<2x32xf32>
    %34 = arith.mulf %14, %24 : vector<2x32xf32>
    %35 = arith.addf %33, %34 : vector<2x32xf32>
    %36 = math.tanh %35 : vector<2x32xf32>
    %37 = arith.mulf %32, %36 : vector<2x32xf32>
    %c0_17 = arith.constant 0 : index
    %c1 = arith.constant 1 : index
    %c0_18 = arith.constant 0 : index
    %38 = vector.load %arg0[%c0_17, %c1, %c0_18] : memref<2x8x128xf32, #tpu.memory_space<vmem>>, vector<2x1x128xf32>
    %39 = vector.shape_cast %38 : vector<2x1x128xf32> to vector<2x128xf32>
    %cst_19 = arith.constant dense<0.000000e+00> : vector<2x128xf32>
    %40 = tpu.matmul %37, %0, %cst_19 {dimension_numbers = #tpu.dot_dimension_numbers<[1], [0], [0], [1], [0, 0, 1, 1], [], []>} : vector<2x32xf32>, vector<32x128xf32>, vector<2x128xf32> -> vector<2x128xf32>
    %41 = arith.addf %40, %39 : vector<2x128xf32>
    %42 = vector.extract_strided_slice %41 {offsets = [0, 0], sizes = [2, 32], strides = [1, 1]} : vector<2x128xf32> to vector<2x32xf32>
    %cst_20 = arith.constant 5.000000e-01 : f32
    %43 = vector.broadcast %cst_20 : f32 to vector<2x32xf32>
    %44 = arith.mulf %43, %42 : vector<2x32xf32>
    %45 = math.tanh %44 : vector<2x32xf32>
    %cst_21 = arith.constant 5.000000e-01 : f32
    %46 = vector.broadcast %cst_21 : f32 to vector<2x32xf32>
    %47 = arith.mulf %46, %45 : vector<2x32xf32>
    %cst_22 = arith.constant 5.000000e-01 : f32
    %48 = vector.broadcast %cst_22 : f32 to vector<2x32xf32>
    %49 = arith.addf %47, %48 : vector<2x32xf32>
    %50 = vector.extract_strided_slice %41 {offsets = [0, 32], sizes = [2, 32], strides = [1, 1]} : vector<2x128xf32> to vector<2x32xf32>
    %cst_23 = arith.constant 5.000000e-01 : f32
    %51 = vector.broadcast %cst_23 : f32 to vector<2x32xf32>
    %52 = arith.mulf %51, %50 : vector<2x32xf32>
    %53 = math.tanh %52 : vector<2x32xf32>
    %cst_24 = arith.constant 5.000000e-01 : f32
    %54 = vector.broadcast %cst_24 : f32 to vector<2x32xf32>
    %55 = arith.mulf %54, %53 : vector<2x32xf32>
    %cst_25 = arith.constant 5.000000e-01 : f32
    %56 = vector.broadcast %cst_25 : f32 to vector<2x32xf32>
    %57 = arith.addf %55, %56 : vector<2x32xf32>
    %58 = vector.extract_strided_slice %41 {offsets = [0, 64], sizes = [2, 32], strides = [1, 1]} : vector<2x128xf32> to vector<2x32xf32>
    %59 = math.tanh %58 : vector<2x32xf32>
    %60 = vector.extract_strided_slice %41 {offsets = [0, 96], sizes = [2, 32], strides = [1, 1]} : vector<2x128xf32> to vector<2x32xf32>
    %cst_26 = arith.constant 5.000000e-01 : f32
    %61 = vector.broadcast %cst_26 : f32 to vector<2x32xf32>
    %62 = arith.mulf %61, %60 : vector<2x32xf32>
    %63 = math.tanh %62 : vector<2x32xf32>
    %cst_27 = arith.constant 5.000000e-01 : f32
    %64 = vector.broadcast %cst_27 : f32 to vector<2x32xf32>
    %65 = arith.mulf %64, %63 : vector<2x32xf32>
    %cst_28 = arith.constant 5.000000e-01 : f32
    %66 = vector.broadcast %cst_28 : f32 to vector<2x32xf32>
    %67 = arith.addf %65, %66 : vector<2x32xf32>
    %68 = arith.mulf %57, %35 : vector<2x32xf32>
    %69 = arith.mulf %49, %59 : vector<2x32xf32>
    %70 = arith.addf %68, %69 : vector<2x32xf32>
    %71 = math.tanh %70 : vector<2x32xf32>
    %72 = arith.mulf %67, %71 : vector<2x32xf32>
    %c0_29 = arith.constant 0 : index
    %c2 = arith.constant 2 : index
    %c0_30 = arith.constant 0 : index
    %73 = vector.load %arg0[%c0_29, %c2, %c0_30] : memref<2x8x128xf32, #tpu.memory_space<vmem>>, vector<2x1x128xf32>
    %74 = vector.shape_cast %73 : vector<2x1x128xf32> to vector<2x128xf32>
    %cst_31 = arith.constant dense<0.000000e+00> : vector<2x128xf32>
    %75 = tpu.matmul %72, %0, %cst_31 {dimension_numbers = #tpu.dot_dimension_numbers<[1], [0], [0], [1], [0, 0, 1, 1], [], []>} : vector<2x32xf32>, vector<32x128xf32>, vector<2x128xf32> -> vector<2x128xf32>
    %76 = arith.addf %75, %74 : vector<2x128xf32>
    %77 = vector.extract_strided_slice %76 {offsets = [0, 0], sizes = [2, 32], strides = [1, 1]} : vector<2x128xf32> to vector<2x32xf32>
    %cst_32 = arith.constant 5.000000e-01 : f32
    %78 = vector.broadcast %cst_32 : f32 to vector<2x32xf32>
    %79 = arith.mulf %78, %77 : vector<2x32xf32>
    %80 = math.tanh %79 : vector<2x32xf32>
    %cst_33 = arith.constant 5.000000e-01 : f32
    %81 = vector.broadcast %cst_33 : f32 to vector<2x32xf32>
    %82 = arith.mulf %81, %80 : vector<2x32xf32>
    %cst_34 = arith.constant 5.000000e-01 : f32
    %83 = vector.broadcast %cst_34 : f32 to vector<2x32xf32>
    %84 = arith.addf %82, %83 : vector<2x32xf32>
    %85 = vector.extract_strided_slice %76 {offsets = [0, 32], sizes = [2, 32], strides = [1, 1]} : vector<2x128xf32> to vector<2x32xf32>
    %cst_35 = arith.constant 5.000000e-01 : f32
    %86 = vector.broadcast %cst_35 : f32 to vector<2x32xf32>
    %87 = arith.mulf %86, %85 : vector<2x32xf32>
    %88 = math.tanh %87 : vector<2x32xf32>
    %cst_36 = arith.constant 5.000000e-01 : f32
    %89 = vector.broadcast %cst_36 : f32 to vector<2x32xf32>
    %90 = arith.mulf %89, %88 : vector<2x32xf32>
    %cst_37 = arith.constant 5.000000e-01 : f32
    %91 = vector.broadcast %cst_37 : f32 to vector<2x32xf32>
    %92 = arith.addf %90, %91 : vector<2x32xf32>
    %93 = vector.extract_strided_slice %76 {offsets = [0, 64], sizes = [2, 32], strides = [1, 1]} : vector<2x128xf32> to vector<2x32xf32>
    %94 = math.tanh %93 : vector<2x32xf32>
    %95 = vector.extract_strided_slice %76 {offsets = [0, 96], sizes = [2, 32], strides = [1, 1]} : vector<2x128xf32> to vector<2x32xf32>
    %cst_38 = arith.constant 5.000000e-01 : f32
    %96 = vector.broadcast %cst_38 : f32 to vector<2x32xf32>
    %97 = arith.mulf %96, %95 : vector<2x32xf32>
    %98 = math.tanh %97 : vector<2x32xf32>
    %cst_39 = arith.constant 5.000000e-01 : f32
    %99 = vector.broadcast %cst_39 : f32 to vector<2x32xf32>
    %100 = arith.mulf %99, %98 : vector<2x32xf32>
    %cst_40 = arith.constant 5.000000e-01 : f32
    %101 = vector.broadcast %cst_40 : f32 to vector<2x32xf32>
    %102 = arith.addf %100, %101 : vector<2x32xf32>
    %103 = arith.mulf %92, %70 : vector<2x32xf32>
    %104 = arith.mulf %84, %94 : vector<2x32xf32>
    %105 = arith.addf %103, %104 : vector<2x32xf32>
    %106 = math.tanh %105 : vector<2x32xf32>
    %107 = arith.mulf %102, %106 : vector<2x32xf32>
    %c0_41 = arith.constant 0 : index
    %c3 = arith.constant 3 : index
    %c0_42 = arith.constant 0 : index
    %108 = vector.load %arg0[%c0_41, %c3, %c0_42] : memref<2x8x128xf32, #tpu.memory_space<vmem>>, vector<2x1x128xf32>
    %109 = vector.shape_cast %108 : vector<2x1x128xf32> to vector<2x128xf32>
    %cst_43 = arith.constant dense<0.000000e+00> : vector<2x128xf32>
    %110 = tpu.matmul %107, %0, %cst_43 {dimension_numbers = #tpu.dot_dimension_numbers<[1], [0], [0], [1], [0, 0, 1, 1], [], []>} : vector<2x32xf32>, vector<32x128xf32>, vector<2x128xf32> -> vector<2x128xf32>
    %111 = arith.addf %110, %109 : vector<2x128xf32>
    %112 = vector.extract_strided_slice %111 {offsets = [0, 0], sizes = [2, 32], strides = [1, 1]} : vector<2x128xf32> to vector<2x32xf32>
    %cst_44 = arith.constant 5.000000e-01 : f32
    %113 = vector.broadcast %cst_44 : f32 to vector<2x32xf32>
    %114 = arith.mulf %113, %112 : vector<2x32xf32>
    %115 = math.tanh %114 : vector<2x32xf32>
    %cst_45 = arith.constant 5.000000e-01 : f32
    %116 = vector.broadcast %cst_45 : f32 to vector<2x32xf32>
    %117 = arith.mulf %116, %115 : vector<2x32xf32>
    %cst_46 = arith.constant 5.000000e-01 : f32
    %118 = vector.broadcast %cst_46 : f32 to vector<2x32xf32>
    %119 = arith.addf %117, %118 : vector<2x32xf32>
    %120 = vector.extract_strided_slice %111 {offsets = [0, 32], sizes = [2, 32], strides = [1, 1]} : vector<2x128xf32> to vector<2x32xf32>
    %cst_47 = arith.constant 5.000000e-01 : f32
    %121 = vector.broadcast %cst_47 : f32 to vector<2x32xf32>
    %122 = arith.mulf %121, %120 : vector<2x32xf32>
    %123 = math.tanh %122 : vector<2x32xf32>
    %cst_48 = arith.constant 5.000000e-01 : f32
    %124 = vector.broadcast %cst_48 : f32 to vector<2x32xf32>
    %125 = arith.mulf %124, %123 : vector<2x32xf32>
    %cst_49 = arith.constant 5.000000e-01 : f32
    %126 = vector.broadcast %cst_49 : f32 to vector<2x32xf32>
    %127 = arith.addf %125, %126 : vector<2x32xf32>
    %128 = vector.extract_strided_slice %111 {offsets = [0, 64], sizes = [2, 32], strides = [1, 1]} : vector<2x128xf32> to vector<2x32xf32>
    %129 = math.tanh %128 : vector<2x32xf32>
    %130 = vector.extract_strided_slice %111 {offsets = [0, 96], sizes = [2, 32], strides = [1, 1]} : vector<2x128xf32> to vector<2x32xf32>
    %cst_50 = arith.constant 5.000000e-01 : f32
    %131 = vector.broadcast %cst_50 : f32 to vector<2x32xf32>
    %132 = arith.mulf %131, %130 : vector<2x32xf32>
    %133 = math.tanh %132 : vector<2x32xf32>
    %cst_51 = arith.constant 5.000000e-01 : f32
    %134 = vector.broadcast %cst_51 : f32 to vector<2x32xf32>
    %135 = arith.mulf %134, %133 : vector<2x32xf32>
    %cst_52 = arith.constant 5.000000e-01 : f32
    %136 = vector.broadcast %cst_52 : f32 to vector<2x32xf32>
    %137 = arith.addf %135, %136 : vector<2x32xf32>
    %138 = arith.mulf %127, %105 : vector<2x32xf32>
    %139 = arith.mulf %119, %129 : vector<2x32xf32>
    %140 = arith.addf %138, %139 : vector<2x32xf32>
    %141 = math.tanh %140 : vector<2x32xf32>
    %142 = arith.mulf %137, %141 : vector<2x32xf32>
    %c0_53 = arith.constant 0 : index
    %c4 = arith.constant 4 : index
    %c0_54 = arith.constant 0 : index
    %143 = vector.load %arg0[%c0_53, %c4, %c0_54] : memref<2x8x128xf32, #tpu.memory_space<vmem>>, vector<2x1x128xf32>
    %144 = vector.shape_cast %143 : vector<2x1x128xf32> to vector<2x128xf32>
    %cst_55 = arith.constant dense<0.000000e+00> : vector<2x128xf32>
    %145 = tpu.matmul %142, %0, %cst_55 {dimension_numbers = #tpu.dot_dimension_numbers<[1], [0], [0], [1], [0, 0, 1, 1], [], []>} : vector<2x32xf32>, vector<32x128xf32>, vector<2x128xf32> -> vector<2x128xf32>
    %146 = arith.addf %145, %144 : vector<2x128xf32>
    %147 = vector.extract_strided_slice %146 {offsets = [0, 0], sizes = [2, 32], strides = [1, 1]} : vector<2x128xf32> to vector<2x32xf32>
    %cst_56 = arith.constant 5.000000e-01 : f32
    %148 = vector.broadcast %cst_56 : f32 to vector<2x32xf32>
    %149 = arith.mulf %148, %147 : vector<2x32xf32>
    %150 = math.tanh %149 : vector<2x32xf32>
    %cst_57 = arith.constant 5.000000e-01 : f32
    %151 = vector.broadcast %cst_57 : f32 to vector<2x32xf32>
    %152 = arith.mulf %151, %150 : vector<2x32xf32>
    %cst_58 = arith.constant 5.000000e-01 : f32
    %153 = vector.broadcast %cst_58 : f32 to vector<2x32xf32>
    %154 = arith.addf %152, %153 : vector<2x32xf32>
    %155 = vector.extract_strided_slice %146 {offsets = [0, 32], sizes = [2, 32], strides = [1, 1]} : vector<2x128xf32> to vector<2x32xf32>
    %cst_59 = arith.constant 5.000000e-01 : f32
    %156 = vector.broadcast %cst_59 : f32 to vector<2x32xf32>
    %157 = arith.mulf %156, %155 : vector<2x32xf32>
    %158 = math.tanh %157 : vector<2x32xf32>
    %cst_60 = arith.constant 5.000000e-01 : f32
    %159 = vector.broadcast %cst_60 : f32 to vector<2x32xf32>
    %160 = arith.mulf %159, %158 : vector<2x32xf32>
    %cst_61 = arith.constant 5.000000e-01 : f32
    %161 = vector.broadcast %cst_61 : f32 to vector<2x32xf32>
    %162 = arith.addf %160, %161 : vector<2x32xf32>
    %163 = vector.extract_strided_slice %146 {offsets = [0, 64], sizes = [2, 32], strides = [1, 1]} : vector<2x128xf32> to vector<2x32xf32>
    %164 = math.tanh %163 : vector<2x32xf32>
    %165 = vector.extract_strided_slice %146 {offsets = [0, 96], sizes = [2, 32], strides = [1, 1]} : vector<2x128xf32> to vector<2x32xf32>
    %cst_62 = arith.constant 5.000000e-01 : f32
    %166 = vector.broadcast %cst_62 : f32 to vector<2x32xf32>
    %167 = arith.mulf %166, %165 : vector<2x32xf32>
    %168 = math.tanh %167 : vector<2x32xf32>
    %cst_63 = arith.constant 5.000000e-01 : f32
    %169 = vector.broadcast %cst_63 : f32 to vector<2x32xf32>
    %170 = arith.mulf %169, %168 : vector<2x32xf32>
    %cst_64 = arith.constant 5.000000e-01 : f32
    %171 = vector.broadcast %cst_64 : f32 to vector<2x32xf32>
    %172 = arith.addf %170, %171 : vector<2x32xf32>
    %173 = arith.mulf %162, %140 : vector<2x32xf32>
    %174 = arith.mulf %154, %164 : vector<2x32xf32>
    %175 = arith.addf %173, %174 : vector<2x32xf32>
    %176 = math.tanh %175 : vector<2x32xf32>
    %177 = arith.mulf %172, %176 : vector<2x32xf32>
    %c0_65 = arith.constant 0 : index
    %c5 = arith.constant 5 : index
    %c0_66 = arith.constant 0 : index
    %178 = vector.load %arg0[%c0_65, %c5, %c0_66] : memref<2x8x128xf32, #tpu.memory_space<vmem>>, vector<2x1x128xf32>
    %179 = vector.shape_cast %178 : vector<2x1x128xf32> to vector<2x128xf32>
    %cst_67 = arith.constant dense<0.000000e+00> : vector<2x128xf32>
    %180 = tpu.matmul %177, %0, %cst_67 {dimension_numbers = #tpu.dot_dimension_numbers<[1], [0], [0], [1], [0, 0, 1, 1], [], []>} : vector<2x32xf32>, vector<32x128xf32>, vector<2x128xf32> -> vector<2x128xf32>
    %181 = arith.addf %180, %179 : vector<2x128xf32>
    %182 = vector.extract_strided_slice %181 {offsets = [0, 0], sizes = [2, 32], strides = [1, 1]} : vector<2x128xf32> to vector<2x32xf32>
    %cst_68 = arith.constant 5.000000e-01 : f32
    %183 = vector.broadcast %cst_68 : f32 to vector<2x32xf32>
    %184 = arith.mulf %183, %182 : vector<2x32xf32>
    %185 = math.tanh %184 : vector<2x32xf32>
    %cst_69 = arith.constant 5.000000e-01 : f32
    %186 = vector.broadcast %cst_69 : f32 to vector<2x32xf32>
    %187 = arith.mulf %186, %185 : vector<2x32xf32>
    %cst_70 = arith.constant 5.000000e-01 : f32
    %188 = vector.broadcast %cst_70 : f32 to vector<2x32xf32>
    %189 = arith.addf %187, %188 : vector<2x32xf32>
    %190 = vector.extract_strided_slice %181 {offsets = [0, 32], sizes = [2, 32], strides = [1, 1]} : vector<2x128xf32> to vector<2x32xf32>
    %cst_71 = arith.constant 5.000000e-01 : f32
    %191 = vector.broadcast %cst_71 : f32 to vector<2x32xf32>
    %192 = arith.mulf %191, %190 : vector<2x32xf32>
    %193 = math.tanh %192 : vector<2x32xf32>
    %cst_72 = arith.constant 5.000000e-01 : f32
    %194 = vector.broadcast %cst_72 : f32 to vector<2x32xf32>
    %195 = arith.mulf %194, %193 : vector<2x32xf32>
    %cst_73 = arith.constant 5.000000e-01 : f32
    %196 = vector.broadcast %cst_73 : f32 to vector<2x32xf32>
    %197 = arith.addf %195, %196 : vector<2x32xf32>
    %198 = vector.extract_strided_slice %181 {offsets = [0, 64], sizes = [2, 32], strides = [1, 1]} : vector<2x128xf32> to vector<2x32xf32>
    %199 = math.tanh %198 : vector<2x32xf32>
    %200 = vector.extract_strided_slice %181 {offsets = [0, 96], sizes = [2, 32], strides = [1, 1]} : vector<2x128xf32> to vector<2x32xf32>
    %cst_74 = arith.constant 5.000000e-01 : f32
    %201 = vector.broadcast %cst_74 : f32 to vector<2x32xf32>
    %202 = arith.mulf %201, %200 : vector<2x32xf32>
    %203 = math.tanh %202 : vector<2x32xf32>
    %cst_75 = arith.constant 5.000000e-01 : f32
    %204 = vector.broadcast %cst_75 : f32 to vector<2x32xf32>
    %205 = arith.mulf %204, %203 : vector<2x32xf32>
    %cst_76 = arith.constant 5.000000e-01 : f32
    %206 = vector.broadcast %cst_76 : f32 to vector<2x32xf32>
    %207 = arith.addf %205, %206 : vector<2x32xf32>
    %208 = arith.mulf %197, %175 : vector<2x32xf32>
    %209 = arith.mulf %189, %199 : vector<2x32xf32>
    %210 = arith.addf %208, %209 : vector<2x32xf32>
    %211 = math.tanh %210 : vector<2x32xf32>
    %212 = arith.mulf %207, %211 : vector<2x32xf32>
    %c0_77 = arith.constant 0 : index
    %c6 = arith.constant 6 : index
    %c0_78 = arith.constant 0 : index
    %213 = vector.load %arg0[%c0_77, %c6, %c0_78] : memref<2x8x128xf32, #tpu.memory_space<vmem>>, vector<2x1x128xf32>
    %214 = vector.shape_cast %213 : vector<2x1x128xf32> to vector<2x128xf32>
    %cst_79 = arith.constant dense<0.000000e+00> : vector<2x128xf32>
    %215 = tpu.matmul %212, %0, %cst_79 {dimension_numbers = #tpu.dot_dimension_numbers<[1], [0], [0], [1], [0, 0, 1, 1], [], []>} : vector<2x32xf32>, vector<32x128xf32>, vector<2x128xf32> -> vector<2x128xf32>
    %216 = arith.addf %215, %214 : vector<2x128xf32>
    %217 = vector.extract_strided_slice %216 {offsets = [0, 0], sizes = [2, 32], strides = [1, 1]} : vector<2x128xf32> to vector<2x32xf32>
    %cst_80 = arith.constant 5.000000e-01 : f32
    %218 = vector.broadcast %cst_80 : f32 to vector<2x32xf32>
    %219 = arith.mulf %218, %217 : vector<2x32xf32>
    %220 = math.tanh %219 : vector<2x32xf32>
    %cst_81 = arith.constant 5.000000e-01 : f32
    %221 = vector.broadcast %cst_81 : f32 to vector<2x32xf32>
    %222 = arith.mulf %221, %220 : vector<2x32xf32>
    %cst_82 = arith.constant 5.000000e-01 : f32
    %223 = vector.broadcast %cst_82 : f32 to vector<2x32xf32>
    %224 = arith.addf %222, %223 : vector<2x32xf32>
    %225 = vector.extract_strided_slice %216 {offsets = [0, 32], sizes = [2, 32], strides = [1, 1]} : vector<2x128xf32> to vector<2x32xf32>
    %cst_83 = arith.constant 5.000000e-01 : f32
    %226 = vector.broadcast %cst_83 : f32 to vector<2x32xf32>
    %227 = arith.mulf %226, %225 : vector<2x32xf32>
    %228 = math.tanh %227 : vector<2x32xf32>
    %cst_84 = arith.constant 5.000000e-01 : f32
    %229 = vector.broadcast %cst_84 : f32 to vector<2x32xf32>
    %230 = arith.mulf %229, %228 : vector<2x32xf32>
    %cst_85 = arith.constant 5.000000e-01 : f32
    %231 = vector.broadcast %cst_85 : f32 to vector<2x32xf32>
    %232 = arith.addf %230, %231 : vector<2x32xf32>
    %233 = vector.extract_strided_slice %216 {offsets = [0, 64], sizes = [2, 32], strides = [1, 1]} : vector<2x128xf32> to vector<2x32xf32>
    %234 = math.tanh %233 : vector<2x32xf32>
    %235 = vector.extract_strided_slice %216 {offsets = [0, 96], sizes = [2, 32], strides = [1, 1]} : vector<2x128xf32> to vector<2x32xf32>
    %cst_86 = arith.constant 5.000000e-01 : f32
    %236 = vector.broadcast %cst_86 : f32 to vector<2x32xf32>
    %237 = arith.mulf %236, %235 : vector<2x32xf32>
    %238 = math.tanh %237 : vector<2x32xf32>
    %cst_87 = arith.constant 5.000000e-01 : f32
    %239 = vector.broadcast %cst_87 : f32 to vector<2x32xf32>
    %240 = arith.mulf %239, %238 : vector<2x32xf32>
    %cst_88 = arith.constant 5.000000e-01 : f32
    %241 = vector.broadcast %cst_88 : f32 to vector<2x32xf32>
    %242 = arith.addf %240, %241 : vector<2x32xf32>
    %243 = arith.mulf %232, %210 : vector<2x32xf32>
    %244 = arith.mulf %224, %234 : vector<2x32xf32>
    %245 = arith.addf %243, %244 : vector<2x32xf32>
    %246 = math.tanh %245 : vector<2x32xf32>
    %247 = arith.mulf %242, %246 : vector<2x32xf32>
    %c0_89 = arith.constant 0 : index
    %c7 = arith.constant 7 : index
    %c0_90 = arith.constant 0 : index
    %248 = vector.load %arg0[%c0_89, %c7, %c0_90] : memref<2x8x128xf32, #tpu.memory_space<vmem>>, vector<2x1x128xf32>
    %249 = vector.shape_cast %248 : vector<2x1x128xf32> to vector<2x128xf32>
    %cst_91 = arith.constant dense<0.000000e+00> : vector<2x128xf32>
    %250 = tpu.matmul %247, %0, %cst_91 {dimension_numbers = #tpu.dot_dimension_numbers<[1], [0], [0], [1], [0, 0, 1, 1], [], []>} : vector<2x32xf32>, vector<32x128xf32>, vector<2x128xf32> -> vector<2x128xf32>
    %251 = arith.addf %250, %249 : vector<2x128xf32>
    %252 = vector.extract_strided_slice %251 {offsets = [0, 0], sizes = [2, 32], strides = [1, 1]} : vector<2x128xf32> to vector<2x32xf32>
    %cst_92 = arith.constant 5.000000e-01 : f32
    %253 = vector.broadcast %cst_92 : f32 to vector<2x32xf32>
    %254 = arith.mulf %253, %252 : vector<2x32xf32>
    %255 = math.tanh %254 : vector<2x32xf32>
    %cst_93 = arith.constant 5.000000e-01 : f32
    %256 = vector.broadcast %cst_93 : f32 to vector<2x32xf32>
    %257 = arith.mulf %256, %255 : vector<2x32xf32>
    %cst_94 = arith.constant 5.000000e-01 : f32
    %258 = vector.broadcast %cst_94 : f32 to vector<2x32xf32>
    %259 = arith.addf %257, %258 : vector<2x32xf32>
    %260 = vector.extract_strided_slice %251 {offsets = [0, 32], sizes = [2, 32], strides = [1, 1]} : vector<2x128xf32> to vector<2x32xf32>
    %cst_95 = arith.constant 5.000000e-01 : f32
    %261 = vector.broadcast %cst_95 : f32 to vector<2x32xf32>
    %262 = arith.mulf %261, %260 : vector<2x32xf32>
    %263 = math.tanh %262 : vector<2x32xf32>
    %cst_96 = arith.constant 5.000000e-01 : f32
    %264 = vector.broadcast %cst_96 : f32 to vector<2x32xf32>
    %265 = arith.mulf %264, %263 : vector<2x32xf32>
    %cst_97 = arith.constant 5.000000e-01 : f32
    %266 = vector.broadcast %cst_97 : f32 to vector<2x32xf32>
    %267 = arith.addf %265, %266 : vector<2x32xf32>
    %268 = vector.extract_strided_slice %251 {offsets = [0, 64], sizes = [2, 32], strides = [1, 1]} : vector<2x128xf32> to vector<2x32xf32>
    %269 = math.tanh %268 : vector<2x32xf32>
    %270 = vector.extract_strided_slice %251 {offsets = [0, 96], sizes = [2, 32], strides = [1, 1]} : vector<2x128xf32> to vector<2x32xf32>
    %cst_98 = arith.constant 5.000000e-01 : f32
    %271 = vector.broadcast %cst_98 : f32 to vector<2x32xf32>
    %272 = arith.mulf %271, %270 : vector<2x32xf32>
    %273 = math.tanh %272 : vector<2x32xf32>
    %cst_99 = arith.constant 5.000000e-01 : f32
    %274 = vector.broadcast %cst_99 : f32 to vector<2x32xf32>
    %275 = arith.mulf %274, %273 : vector<2x32xf32>
    %cst_100 = arith.constant 5.000000e-01 : f32
    %276 = vector.broadcast %cst_100 : f32 to vector<2x32xf32>
    %277 = arith.addf %275, %276 : vector<2x32xf32>
    %278 = arith.mulf %267, %245 : vector<2x32xf32>
    %279 = arith.mulf %259, %269 : vector<2x32xf32>
    %280 = arith.addf %278, %279 : vector<2x32xf32>
    %281 = math.tanh %280 : vector<2x32xf32>
    %282 = arith.mulf %277, %281 : vector<2x32xf32>
    %283 = tpu.concatenate %37, %72, %107, %142, %177, %212, %247, %282 in 1 : vector<2x32xf32>, vector<2x32xf32>, vector<2x32xf32>, vector<2x32xf32>, vector<2x32xf32>, vector<2x32xf32>, vector<2x32xf32>, vector<2x32xf32> -> vector<2x256xf32>
    %c0_101 = arith.constant 0 : index
    %c0_102 = arith.constant 0 : index
    %284 = vector.load %arg4[%c0_101, %c0_102] : memref<2x256xf32, #tpu.memory_space<vmem>>, vector<2x256xf32>
    tpu.vector_store %arg4[%c0_101, %c0_102], %283 {strides = array<i32>} : memref<2x256xf32, #tpu.memory_space<vmem>>, vector<2x256xf32>,
    %c0_103 = arith.constant 0 : index
    %c0_104 = arith.constant 0 : index
    %285 = vector.load %arg5[%c0_103, %c0_104] : memref<2x32xf32, #tpu.memory_space<vmem>>, vector<2x32xf32>
    tpu.vector_store %arg5[%c0_103, %c0_104], %282 {strides = array<i32>} : memref<2x32xf32, #tpu.memory_space<vmem>>, vector<2x32xf32>,
    %c0_105 = arith.constant 0 : index
    %c0_106 = arith.constant 0 : index
    %286 = vector.load %arg6[%c0_105, %c0_106] : memref<2x32xf32, #tpu.memory_space<vmem>>, vector<2x32xf32>
    tpu.vector_store %arg6[%c0_105, %c0_106], %280 {strides = array<i32>} : memref<2x32xf32, #tpu.memory_space<vmem>>, vector<2x32xf32>,
    return
  }
}

</mosaic_0001>

<bundles_post_ra>
// kernel: _encoder_forward.1
= control target key start
LH: loop header
LB: loop body
LE: loop exit
PB: predicated region body
PF: predicated region fallthrough
CT: control target
= control target key end

     0   :  { %12 = vsyncpa [#allocation3], 0  ;;  %v1177_v1 = vmov 0.0   ;;  %vm1178_vm0 = vmmov 0   ;;  %s1457_s0 = inlined_call_operand.vmem [shape: f32[2,8,128], index: 0, kind: input, shape index: {}]   ;;  %s1458_s1 = inlined_call_operand.vmem [shape: f32[32,128], index: 1, kind: input, shape index: {}]   ;;  %s1459_s2 = inlined_call_operand.vmem [shape: f32[2,32], index: 2, kind: input, shape index: {}]   ;;  %s1460_s3 = inlined_call_operand.vmem [shape: f32[2,32], index: 3, kind: input, shape index: {}]   ;;  %s1461_s4 = inlined_call_operand.vmem [shape: f32[2,256], index: 4, kind: output, shape index: {0}]   ;;  %s1462_s5 = inlined_call_operand.hbm [shape: f32[2,32], index: 5, kind: output, shape index: {1}]   ;;  %s1463_s6 = inlined_call_operand.hbm [shape: f32[2,32], index: 6, kind: output, shape index: {2}]  }
   0x1   :  { %v1222_v0 = vld [vmem:[%s1458_s1 + $0x18] sm:$0xff]  ;;  %990 = vmatprep.subr.mxu0 %v1177_v1  ;;  %v1228_v2 = vld [vmem:[%s1458_s1 + $0x10] sm:$0xff]  ;;  %998 = vmatprep.mubr.msk.f32.mxu0 %vm1178_vm0, %v1177_v1 }
   0x2   :  { %991 = vmatpush3.msra.mxu0 %v1222_v0  ;;  %1001 = vmatprep.subr.mxu1 %v1177_v1 }
   0x3   :  { %13 = vsyncpa [#allocation5], 0  ;;  %992 = vmatprep.subr.mxu0 %v1177_v1  ;;  %v1238_v3 = vld [vmem:[%s1458_s1 + $0x8] sm:$0xff]  ;;  %1002 = vmatpush3.msra.mxu1 %v1222_v0  ;;  %v1247_v4 = vld [vmem:[%s1458_s1] sm:$0xff]  ;;  %vm36_vm1 = vcmask 261120   ;;  %vm33_vm2 = vcmask 1041409  }
   0x4   :  { %993 = vmatpush3.msra.mxu0 %v1228_v2  ;;  %1003 = vmatprep.subr.mxu1 %v1177_v1  ;;  %v26_v5 = vld [vmem:[%s1459_s2] sm:$0x3]  ;;  %v29_v6 = vld [vmem:[%s1457_s0 + $0x8] sm:$0x1]  ;;  %s1179_s9 = smov 64   ;;  %s1180_s12 = smov 32  }
   0x5   :  { %994 = vmatprep.subr.mxu0 %v1177_v1  ;;  %1004 = vmatpush3.msra.mxu1 %v1228_v2  ;;  %v32_v7 = vrot.slane %v29_v6, 7  ;;  %v28_v8 = vld [vmem:[%s1457_s0] sm:$0x1]  ;;  %v137_v29 = vld [vmem:[%s1457_s0 + $0x9] sm:$0x1]  ;;  %vm879_vm3 = vcmask 523264  }
   0x6   :  { %995 = vmatpush3.msra.mxu0 %v1238_v3  ;;  %1005 = vmatprep.subr.mxu1 %v1177_v1  ;;  %v27_v14 = vld [vmem:[%s1460_s3] sm:$0x3]  ;;  %v143_v30 = vrot.slane %v137_v29, 7  ;;  %v241_v50 = vld [vmem:[%s1457_s0 + $0xa] sm:$0x1]  ;;  %vm881_vm4 = vcmask 785408  }
   0x7   :  { %996 = vmatprep.subr.mxu0 %v1177_v1  ;;  %1006 = vmatpush3.msra.mxu1 %v1238_v3  ;;  %v34_v9 = vsel %vm33_vm2, %v32_v7, %v28_v8  ;;  %v136_v31 = vld [vmem:[%s1457_s0 + $0x1] sm:$0x1]  ;;  %v247_v51 = vrot.slane %v241_v50, 7  ;;  %v240_v52 = vld [vmem:[%s1457_s0 + $0x2] sm:$0x1]  ;;  %vm902_vm5 = vcmask 254976  }
   0x8   :  { %997 = vmatpush3.msra.mxu0 %v1247_v4  ;;  %1007 = vmatprep.subr.mxu1 %v1177_v1  ;;  %v144_v32 = vsel %vm33_vm2, %v143_v30, %v136_v31 }
   0x9   :  { %999 = vmatmul.mubr.msk.f32.vlgmr.msra.gmra.mxu0 %vm36_vm1, %v26_v5  ;;  %1008 = vmatpush3.msra.mxu1 %v1247_v4  ;;  %v248_v53 = vsel %vm33_vm2, %v247_v51, %v240_v52 }
   0xa   :  { %1009 = vmatprep.mubr.msk.f32.mxu1 %vm1178_vm0, %v1177_v1  ;;  %1012 = vmatprep.subr.mxu0 %v1177_v1 }
   0xb   :  { %1013 = vmatpush3.msra.mxu0 %v1222_v0  ;;  %1020 = vmatprep.mubr.msk.f32.mxu0 %vm1178_vm0, %v1177_v1 }
   0xc   :  { %1014 = vmatprep.subr.mxu0 %v1177_v1  ;;  %1023 = vmatprep.subr.mxu1 %v1177_v1 }
   0xd   :  { %1015 = vmatpush3.msra.mxu0 %v1228_v2 }
   0xe   :  { %1016 = vmatprep.subr.mxu0 %v1177_v1 }
   0xf   :  { %1017 = vmatpush3.msra.mxu0 %v1238_v3 }
  0x10   :  { %1018 = vmatprep.subr.mxu0 %v1177_v1 }
  0x11   :  { %1019 = vmatpush3.msra.mxu0 %v1247_v4 }
  0x12   :  { %1034 = vmatprep.subr.mxu0 %v1177_v1 }
  0xc9   :  { %v106_v10 = vpop.f32.mrf.mxu0 }
  0xca   :  { %v107_v11 = vadd.f32 %v106_v10, %v34_v9 }
  0xcb   :  { %v1000_v12 = vpop.f32.mrf.mxu0 }
  0xcc   :  { %1085 = vtanh.f32 %v107_v11  ;;  %v110_v15 = vmul.f32 0.5, %v107_v11  ;;  %v345_v12 = vld [vmem:[%s1457_s0 + $0xb] sm:$0x1] }
  0xce   :  { %1087 = vtanh.f32 %v110_v15 }
  0xd9   :  { %v1086_v13 = vpop.eup %1085 }
  0xda   :  { %121 = vrot.lane.b32.xlu0 %v1086_v13, %s1179_s9  ;;  %v351_v13 = vrot.slane %v345_v12, 7 }
  0xdb   :  { %v1088_v16 = vpop.eup %1087 }
  0xdc   :  { %v112_v17 = vmul.f32 0.5, %v1088_v16 }
  0xde   :  { %116 = vrot.lane.b32.xlu0 %v27_v14, %s1180_s12  ;;  %v113_v18 = vadd.f32 0.5, %v112_v17  ;;  %v344_v14 = vld [vmem:[%s1457_s0 + $0x3] sm:$0x1] }
  0xdf   :  { %v352_v15 = vsel %vm33_vm2, %v351_v13, %v344_v14  ;;  %v657_v14 = vld [vmem:[%s1457_s0 + $0xe] sm:$0x1] }
 0x14c   :  { %v122_v19 = vpop.permute.xlu0 %121 }
 0x14d   :  { %v124_v20 = vmul.f32 %v122_v19, %v113_v18 }
 0x14f   :  { %126 = vrot.lane.b32.xlu1 %v124_v20, %s1180_s12 }
 0x150   :  { %v117_v21 = vpop.permute.xlu0 %116 }
 0x151   :  { %v119_v22 = vmul.f32 %v117_v21, %v113_v18 }
 0x1c1   :  { %v127_v23 = vpop.permute.xlu1 %126 }
 0x1c2   :  { %v129_v24 = vadd.f32 %v127_v23, %v119_v22 }
 0x1c4   :  { %1089 = vtanh.f32 %v129_v24 }
 0x1d1   :  { %v1090_v25 = vpop.eup %1089 }
 0x1d2   :  { %132 = vrot.lane.b32.xlu1 %v1090_v25, %s1179_s9 }
 0x244   :  { %v133_v26 = vpop.permute.xlu1 %132 }
 0x245   :  { %v135_v27 = vmul.f32 %v133_v26, %v113_v18 }
 0x247   :  { %139 = vrot.lane.b32.xlu0 %v135_v27, %s1180_s12 }
 0x2b9   :  { %v1290_v28 = vpop.permute.xlu0 %139 }
 0x2ba   :  { %1010 = vmatmul.mubr.msk.f32.vlgmr.msra.gmra.mxu1 %vm36_vm1, %v1290_v28 }
 0x2bb   :  { %1024 = vmatpush3.msra.mxu1 %v1222_v0  ;;  %1031 = vmatprep.mubr.msk.f32.mxu1 %vm1178_vm0, %v1177_v1 }
 0x2bc   :  { %1025 = vmatprep.subr.mxu1 %v1177_v1 }
 0x2bd   :  { %1026 = vmatpush3.msra.mxu1 %v1228_v2 }
 0x2be   :  { %1027 = vmatprep.subr.mxu1 %v1177_v1 }
 0x2bf   :  { %1028 = vmatpush3.msra.mxu1 %v1238_v3 }
 0x2c0   :  { %1029 = vmatprep.subr.mxu1 %v1177_v1 }
 0x2c1   :  { %1030 = vmatpush3.msra.mxu1 %v1247_v4 }
 0x2c2   :  { %1045 = vmatprep.subr.mxu1 %v1177_v1 }
 0x37a   :  { %v214_v33 = vpop.f32.mrf.mxu1 }
 0x37b   :  { %v215_v34 = vadd.f32 %v214_v33, %v144_v32 }
 0x37c   :  { %v1011_v35 = vpop.f32.mrf.mxu1 }
 0x37d   :  { %1091 = vtanh.f32 %v215_v34  ;;  %v218_v37 = vmul.f32 0.5, %v215_v34  ;;  %v449_v34 = vld [vmem:[%s1457_s0 + $0xc] sm:$0x1] }
 0x37e   :  { %v455_v35 = vrot.slane %v449_v34, 7 }
 0x37f   :  { %1093 = vtanh.f32 %v218_v37 }
 0x38a   :  { %v1092_v36 = vpop.eup %1091 }
 0x38b   :  { %225 = vrot.lane.b32.xlu1 %v1092_v36, %s1179_s9  ;;  %v448_v36 = vld [vmem:[%s1457_s0 + $0x4] sm:$0x1] }
 0x38c   :  { %v1094_v38 = vpop.eup %1093  ;;  %v456_v37 = vsel %vm33_vm2, %v455_v35, %v448_v36 }
 0x38d   :  { %v220_v39 = vmul.f32 0.5, %v1094_v38 }
 0x38f   :  { %v221_v40 = vadd.f32 0.5, %v220_v39 }
 0x391   :  { %v223_v43 = vmul.f32 %v221_v40, %v129_v24 }
 0x3fd   :  { %v226_v41 = vpop.permute.xlu1 %225 }
 0x3fe   :  { %v228_v42 = vmul.f32 %v226_v41, %v221_v40 }
 0x400   :  { %230 = vrot.lane.b32.xlu0 %v228_v42, %s1180_s12 }
 0x472   :  { %v231_v44 = vpop.permute.xlu0 %230 }
 0x473   :  { %v233_v45 = vadd.f32 %v231_v44, %v223_v43 }
 0x475   :  { %1095 = vtanh.f32 %v233_v45 }
 0x482   :  { %v1096_v46 = vpop.eup %1095 }
 0x483   :  { %236 = vrot.lane.b32.xlu1 %v1096_v46, %s1179_s9 }
 0x4f5   :  { %v237_v47 = vpop.permute.xlu1 %236 }
 0x4f6   :  { %v1314_v48 = vmul.f32 %v237_v47, %v221_v40 }
 0x4f8   :  { %243 = vrot.lane.b32.xlu0 %v1314_v48, %s1180_s12 }
 0x56a   :  { %v244_v49 = vpop.permute.xlu0 %243 }
 0x56b   :  { %1021 = vmatmul.mubr.msk.f32.vlgmr.msra.gmra.mxu0 %vm36_vm1, %v244_v49 }
 0x56c   :  { %1035 = vmatpush3.msra.mxu0 %v1222_v0  ;;  %1042 = vmatprep.mubr.msk.f32.mxu0 %vm1178_vm0, %v1177_v1 }
 0x56d   :  { %1036 = vmatprep.subr.mxu0 %v1177_v1 }
 0x56e   :  { %1037 = vmatpush3.msra.mxu0 %v1228_v2 }
 0x56f   :  { %1038 = vmatprep.subr.mxu0 %v1177_v1 }
 0x570   :  { %1039 = vmatpush3.msra.mxu0 %v1238_v3 }
 0x571   :  { %1040 = vmatprep.subr.mxu0 %v1177_v1 }
 0x572   :  { %1041 = vmatpush3.msra.mxu0 %v1247_v4 }
 0x573   :  { %1056 = vmatprep.subr.mxu0 %v1177_v1 }
 0x62b   :  { %v318_v54 = vpop.f32.mrf.mxu0 }
 0x62c   :  { %v319_v55 = vadd.f32 %v318_v54, %v248_v53 }
 0x62d   :  { %v1022_v56 = vpop.f32.mrf.mxu0 }
 0x62e   :  { %1097 = vtanh.f32 %v319_v55  ;;  %v322_v58 = vmul.f32 0.5, %v319_v55  ;;  %v553_v56 = vld [vmem:[%s1457_s0 + $0xd] sm:$0x1] }
 0x630   :  { %1099 = vtanh.f32 %v322_v58 }
 0x63b   :  { %v1098_v57 = vpop.eup %1097 }
 0x63c   :  { %329 = vrot.lane.b32.xlu1 %v1098_v57, %s1179_s9  ;;  %v552_v57 = vld [vmem:[%s1457_s0 + $0x5] sm:$0x1] }
 0x63d   :  { %v1100_v59 = vpop.eup %1099 }
 0x63e   :  { %v324_v60 = vmul.f32 0.5, %v1100_v59 }
 0x640   :  { %v325_v61 = vadd.f32 0.5, %v324_v60 }
 0x642   :  { %v327_v5 = vmul.f32 %v325_v61, %v233_v45 }
 0x6ae   :  { %v330_v62 = vpop.permute.xlu1 %329 }
 0x6af   :  { %v332_v63 = vmul.f32 %v330_v62, %v325_v61 }
 0x6b1   :  { %334 = vrot.lane.b32.xlu0 %v332_v63, %s1180_s12 }
 0x723   :  { %v335_v6 = vpop.permute.xlu0 %334 }
 0x724   :  { %v337_v7 = vadd.f32 %v335_v6, %v327_v5 }
 0x726   :  { %1101 = vtanh.f32 %v337_v7 }
 0x733   :  { %v1102_v8 = vpop.eup %1101 }
 0x734   :  { %340 = vrot.lane.b32.xlu1 %v1102_v8, %s1179_s9 }
 0x7a6   :  { %v341_v9 = vpop.permute.xlu1 %340 }
 0x7a7   :  { %v1339_v10 = vmul.f32 %v341_v9, %v325_v61 }
 0x7a9   :  { %347 = vrot.lane.b32.xlu0 %v1339_v10, %s1180_s12 }
 0x81b   :  { %v348_v11 = vpop.permute.xlu0 %347 }
 0x81c   :  { %1032 = vmatmul.mubr.msk.f32.vlgmr.msra.gmra.mxu1 %vm36_vm1, %v348_v11 }
 0x81d   :  { %1046 = vmatpush3.msra.mxu1 %v1222_v0  ;;  %1053 = vmatprep.mubr.msk.f32.mxu1 %vm1178_vm0, %v1177_v1 }
 0x81e   :  { %1047 = vmatprep.subr.mxu1 %v1177_v1 }
 0x81f   :  { %1048 = vmatpush3.msra.mxu1 %v1228_v2 }
 0x820   :  { %1049 = vmatprep.subr.mxu1 %v1177_v1 }
 0x821   :  { %1050 = vmatpush3.msra.mxu1 %v1238_v3 }
 0x822   :  { %1051 = vmatprep.subr.mxu1 %v1177_v1 }
 0x823   :  { %1052 = vmatpush3.msra.mxu1 %v1247_v4 }
 0x824   :  { %1067 = vmatprep.subr.mxu1 %v1177_v1 }
 0x8dc   :  { %v422_v16 = vpop.f32.mrf.mxu1 }
 0x8dd   :  { %v423_v17 = vadd.f32 %v422_v16, %v352_v15  ;;  %v663_v15 = vrot.slane %v657_v14, 7  ;;  %v656_v16 = vld [vmem:[%s1457_s0 + $0x6] sm:$0x1] }
 0x8de   :  { %v1033_v18 = vpop.f32.mrf.mxu1 }
 0x8df   :  { %1103 = vtanh.f32 %v423_v17  ;;  %v426_v20 = vmul.f32 0.5, %v423_v17  ;;  %v664_v17 = vsel %vm33_vm2, %v663_v15, %v656_v16 }
 0x8e1   :  { %1105 = vtanh.f32 %v426_v20 }
 0x8ec   :  { %v1104_v19 = vpop.eup %1103 }
 0x8ed   :  { %433 = vrot.lane.b32.xlu1 %v1104_v19, %s1179_s9 }
 0x8ee   :  { %v1106_v21 = vpop.eup %1105 }
 0x8ef   :  { %v428_v22 = vmul.f32 0.5, %v1106_v21 }
 0x8f1   :  { %v429_v23 = vadd.f32 0.5, %v428_v22 }
 0x8f3   :  { %v431_v26 = vmul.f32 %v429_v23, %v337_v7 }
 0x95f   :  { %v434_v24 = vpop.permute.xlu1 %433 }
 0x960   :  { %v436_v25 = vmul.f32 %v434_v24, %v429_v23 }
 0x962   :  { %438 = vrot.lane.b32.xlu0 %v436_v25, %s1180_s12 }
 0x9d4   :  { %v439_v27 = vpop.permute.xlu0 %438 }
 0x9d5   :  { %v441_v29 = vadd.f32 %v439_v27, %v431_v26 }
 0x9d7   :  { %1107 = vtanh.f32 %v441_v29 }
 0x9e4   :  { %v1108_v30 = vpop.eup %1107 }
 0x9e5   :  { %444 = vrot.lane.b32.xlu1 %v1108_v30, %s1179_s9 }
 0xa57   :  { %v445_v31 = vpop.permute.xlu1 %444 }
 0xa58   :  { %v1364_v32 = vmul.f32 %v445_v31, %v429_v23 }
 0xa5a   :  { %451 = vrot.lane.b32.xlu0 %v1364_v32, %s1180_s12 }
 0xacc   :  { %v452_v33 = vpop.permute.xlu0 %451 }
 0xacd   :  { %1043 = vmatmul.mubr.msk.f32.vlgmr.msra.gmra.mxu0 %vm36_vm1, %v452_v33 }
 0xace   :  { %1057 = vmatpush3.msra.mxu0 %v1222_v0  ;;  %1064 = vmatprep.mubr.msk.f32.mxu0 %vm1178_vm0, %v1177_v1 }
 0xacf   :  { %1058 = vmatprep.subr.mxu0 %v1177_v1 }
 0xad0   :  { %1059 = vmatpush3.msra.mxu0 %v1228_v2 }
 0xad1   :  { %1060 = vmatprep.subr.mxu0 %v1177_v1 }
 0xad2   :  { %1061 = vmatpush3.msra.mxu0 %v1238_v3 }
 0xad3   :  { %1062 = vmatprep.subr.mxu0 %v1177_v1 }
 0xad4   :  { %1063 = vmatpush3.msra.mxu0 %v1247_v4 }
 0xb8d   :  { %v526_v38 = vpop.f32.mrf.mxu0 }
 0xb8e   :  { %v527_v39 = vadd.f32 %v526_v38, %v456_v37  ;;  %v761_v37 = vld [vmem:[%s1457_s0 + $0xf] sm:$0x1] }
 0xb8f   :  { %v1044_v40 = vpop.f32.mrf.mxu0  ;;  %v767_v38 = vrot.slane %v761_v37, 7 }
 0xb90   :  { %1109 = vtanh.f32 %v527_v39  ;;  %v530_v42 = vmul.f32 0.5, %v527_v39  ;;  %v760_v39 = vld [vmem:[%s1457_s0 + $0x7] sm:$0x1]  ;;  %s1181_s0 = smov 96  }
 0xb91   :  { %v768_v40 = vsel %vm33_vm2, %v767_v38, %v760_v39 }
 0xb92   :  { %1111 = vtanh.f32 %v530_v42 }
 0xb9d   :  { %v1110_v41 = vpop.eup %1109 }
 0xb9e   :  { %537 = vrot.lane.b32.xlu1 %v1110_v41, %s1179_s9 }
 0xb9f   :  { %v1112_v43 = vpop.eup %1111 }
 0xba0   :  { %v532_v44 = vmul.f32 0.5, %v1112_v43 }
 0xba2   :  { %v533_v45 = vadd.f32 0.5, %v532_v44 }
 0xba4   :  { %v535_v49 = vmul.f32 %v533_v45, %v441_v29 }
 0xc10   :  { %v538_v46 = vpop.permute.xlu1 %537 }
 0xc11   :  { %v540_v47 = vmul.f32 %v538_v46, %v533_v45 }
 0xc13   :  { %542 = vrot.lane.b32.xlu0 %v540_v47, %s1180_s12 }
 0xc85   :  { %v543_v50 = vpop.permute.xlu0 %542 }
 0xc86   :  { %v545_v51 = vadd.f32 %v543_v50, %v535_v49 }
 0xc88   :  { %1113 = vtanh.f32 %v545_v51 }
 0xc95   :  { %v1114_v52 = vpop.eup %1113 }
 0xc96   :  { %548 = vrot.lane.b32.xlu1 %v1114_v52, %s1179_s9 }
 0xd08   :  { %v549_v53 = vpop.permute.xlu1 %548 }
 0xd09   :  { %v551_v54 = vmul.f32 %v549_v53, %v533_v45 }
 0xd0b   :  { %555 = vrot.lane.b32.xlu0 %v551_v54, %s1180_s12 }
 0xd7d   :  { %v1389_v55 = vpop.permute.xlu0 %555 }
 0xd7e   :  { %1054 = vmatmul.mubr.msk.f32.vlgmr.msra.gmra.mxu1 %vm36_vm1, %v1389_v55 }
 0xd7f   :  { %1068 = vmatpush3.msra.mxu1 %v1222_v0  ;;  %1075 = vmatprep.mubr.msk.f32.mxu1 %vm1178_vm0, %v1177_v1  ;;  %v559_v0 = vrot.slane %v553_v56, 7 }
 0xd80   :  { %1069 = vmatprep.subr.mxu1 %v1177_v1 }
 0xd81   :  { %1070 = vmatpush3.msra.mxu1 %v1228_v2  ;;  %v560_v58 = vsel %vm33_vm2, %v559_v0, %v552_v57 }
 0xd82   :  { %1071 = vmatprep.subr.mxu1 %v1177_v1 }
 0xd83   :  { %1072 = vmatpush3.msra.mxu1 %v1238_v3 }
 0xd84   :  { %1073 = vmatprep.subr.mxu1 %v1177_v1 }
 0xd85   :  { %1074 = vmatpush3.msra.mxu1 %v1247_v4 }
 0xe3e   :  { %v630_v2 = vpop.f32.mrf.mxu1 }
 0xe3f   :  { %v631_v59 = vadd.f32 %v630_v2, %v560_v58 }
 0xe40   :  { %v1055_v60 = vpop.f32.mrf.mxu1 }
 0xe41   :  { %1115 = vtanh.f32 %v631_v59  ;;  %v634_v1 = vmul.f32 0.5, %v631_v59 }
 0xe43   :  { %1117 = vtanh.f32 %v634_v1 }
 0xe4e   :  { %v1116_v3 = vpop.eup %1115 }
 0xe4f   :  { %641 = vrot.lane.b32.xlu1 %v1116_v3, %s1179_s9 }
 0xe50   :  { %v1118_v4 = vpop.eup %1117 }
 0xe51   :  { %v636_v61 = vmul.f32 0.5, %v1118_v4 }
 0xe53   :  { %v637_v62 = vadd.f32 0.5, %v636_v61 }
 0xe55   :  { %v639_v6 = vmul.f32 %v637_v62, %v545_v51 }
 0xec1   :  { %v642_v63 = vpop.permute.xlu1 %641 }
 0xec2   :  { %v644_v5 = vmul.f32 %v642_v63, %v637_v62 }
 0xec4   :  { %646 = vrot.lane.b32.xlu0 %v644_v5, %s1180_s12 }
 0xf36   :  { %v647_v7 = vpop.permute.xlu0 %646 }
 0xf37   :  { %v649_v8 = vadd.f32 %v647_v7, %v639_v6 }
 0xf39   :  { %1119 = vtanh.f32 %v649_v8 }
 0xf46   :  { %v1120_v9 = vpop.eup %1119 }
 0xf47   :  { %652 = vrot.lane.b32.xlu1 %v1120_v9, %s1179_s9 }
 0xfb9   :  { %v653_v11 = vpop.permute.xlu1 %652 }
 0xfba   :  { %v655_v12 = vmul.f32 %v653_v11, %v637_v62 }
 0xfbc   :  { %659 = vrot.lane.b32.xlu0 %v655_v12, %s1180_s12 }
0x102e   :  { %v660_v13 = vpop.permute.xlu0 %659 }
0x102f   :  { %1065 = vmatmul.mubr.msk.f32.vlgmr.msra.gmra.mxu0 %vm36_vm1, %v660_v13 }
0x10ef   :  { %v734_v18 = vpop.f32.mrf.mxu0 }
0x10f0   :  { %v735_v19 = vadd.f32 %v734_v18, %v664_v17 }
0x10f1   :  { %v1066_v20 = vpop.f32.mrf.mxu0 }
0x10f2   :  { %1121 = vtanh.f32 %v735_v19  ;;  %v738_v22 = vmul.f32 0.5, %v735_v19 }
0x10f4   :  { %1123 = vtanh.f32 %v738_v22 }
0x10ff   :  { %v1122_v21 = vpop.eup %1121 }
0x1100   :  { %745 = vrot.lane.b32.xlu1 %v1122_v21, %s1179_s9 }
0x1101   :  { %v1124_v23 = vpop.eup %1123 }
0x1102   :  { %v740_v24 = vmul.f32 0.5, %v1124_v23 }
0x1104   :  { %v741_v25 = vadd.f32 0.5, %v740_v24 }
0x1106   :  { %v743_v29 = vmul.f32 %v741_v25, %v649_v8 }
0x1172   :  { %v746_v26 = vpop.permute.xlu1 %745 }
0x1173   :  { %v748_v27 = vmul.f32 %v746_v26, %v741_v25 }
0x1175   :  { %750 = vrot.lane.b32.xlu0 %v748_v27, %s1180_s12 }
0x11e7   :  { %v751_v30 = vpop.permute.xlu0 %750 }
0x11e8   :  { %v753_v31 = vadd.f32 %v751_v30, %v743_v29 }
0x11ea   :  { %1125 = vtanh.f32 %v753_v31 }
0x11f7   :  { %v1126_v33 = vpop.eup %1125 }
0x11f8   :  { %756 = vrot.lane.b32.xlu1 %v1126_v33, %s1179_s9 }
0x126a   :  { %v757_v34 = vpop.permute.xlu1 %756 }
0x126b   :  { %v759_v35 = vmul.f32 %v757_v34, %v741_v25 }
0x126d   :  { %763 = vrot.lane.b32.xlu0 %v759_v35, %s1180_s12 }
0x12df   :  { %v764_v36 = vpop.permute.xlu0 %763 }
0x12e0   :  { %1076 = vmatmul.mubr.msk.f32.vlgmr.msra.gmra.mxu1 %vm36_vm1, %v764_v36 }
0x13a0   :  { %v838_v41 = vpop.f32.mrf.mxu1 }
0x13a1   :  { %v839_v42 = vadd.f32 %v838_v41, %v768_v40 }
0x13a2   :  { %v1077_v43 = vpop.f32.mrf.mxu1 }
0x13a3   :  { %1127 = vtanh.f32 %v839_v42  ;;  %v842_v45 = vmul.f32 0.5, %v839_v42 }
0x13a5   :  { %1129 = vtanh.f32 %v842_v45 }
0x13b0   :  { %v1128_v44 = vpop.eup %1127 }
0x13b1   :  { %849 = vrot.lane.b32.xlu1 %v1128_v44, %s1179_s9 }
0x13b2   :  { %v1130_v46 = vpop.eup %1129 }
0x13b3   :  { %v844_v47 = vmul.f32 0.5, %v1130_v46 }
0x13b5   :  { %v845_v49 = vadd.f32 0.5, %v844_v47 }
0x13b7   :  { %v847_v52 = vmul.f32 %v845_v49, %v753_v31 }
0x1423   :  { %v850_v50 = vpop.permute.xlu1 %849 }
0x1424   :  { %v852_v51 = vmul.f32 %v850_v50, %v845_v49 }
0x1426   :  { %854 = vrot.lane.b32.xlu0 %v852_v51, %s1180_s12 }
0x142a   :  { %865 = vrot.lane.b32.xlu0 %v1314_v48, %s1179_s9 }
0x142e   :  { %868 = vrot.lane.b32.xlu0 %v1339_v10, %s1181_s0 }
0x1498   :  { %v855_v53 = vpop.permute.xlu0 %854 }
0x1499   :  { %v857_v54 = vadd.f32 %v855_v53, %v847_v52 }
0x149b   :  { %1131 = vtanh.f32 %v857_v54 }
0x149c   :  { %v866_v0 = vpop.permute.xlu0 %865 }
0x149d   :  { %v878_v10 = vsel %vm36_vm1, %v1290_v28, %v866_v0 }
0x14a0   :  { %v869_v48 = vpop.permute.xlu0 %868 }
0x14a1   :  { %v880_v59 = vsel %vm879_vm3, %v878_v10, %v869_v48 }
0x14a2   :  { %v882_v4 = vsel %vm881_vm4, %v880_v59, %v1364_v32 }
0x14a8   :  { %v1132_v56 = vpop.eup %1131 }
0x14a9   :  { %860 = vrot.lane.b32.xlu1 %v1132_v56, %s1179_s9 }
0x14ad   :  { %872 = vrot.lane.b32.xlu1 %v655_v12, %s1179_s9  ;;  %s1182_s9 = smov [#allocation4]  }
0x14ae   :  { %s927_s15 = sshll.u32 %s1182_s9, 4  ;;  %s928_s15 = int_to_ptr.vmem [resolvable:$true] %s927_s15 }
0x14af   :  { %s1133_s17 = scalar_lea.vmem %s928_s15, 32  ;;  %p1138_p1 = scmp.lt.s32.totalorder %s928_s15, %s928_s15 }
0x14b0   :  { %p1134_p0 = scmp.ne.s32.totalorder %s928_s15, %s1133_s17  ;;  %p1139_p2 = scmp.lt.s32.totalorder %s1133_s17, %s1133_s17 }
0x14b1   :  { %875 = vrot.lane.b32.xlu1 %v759_v35, %s1181_s0 }
0x14b2   :  { %p1140_p3 = por %p1139_p2, %p1138_p1 }
0x14b4   :  { %p1141_p4 = pnand %p1140_p3, %p1134_p0 }
0x14b5   :  { %905 = vrot.lane.b32.xlu1 %v857_v54, %s1181_s0 }
0x151b   :  { %v861_v57 = vpop.permute.xlu1 %860 }
0x151c   :  { %v863_v58 = vmul.f32 %v861_v57, %v845_v49 }
0x151e   :  { %899 = vrot.lane.b32.xlu0 %v863_v58, %s1180_s12 }
0x151f   :  { %v873_v2 = vpop.permute.xlu1 %872 }
0x1520   :  { %v883_v60 = vsel %vm36_vm1, %v1389_v55, %v873_v2 }
0x1523   :  { %v876_v3 = vpop.permute.xlu1 %875 }
0x1524   :  { %v884_v1 = vsel %vm879_vm3, %v883_v60, %v876_v3 }
0x1525   :  { %v885_v61 = vsel %vm881_vm4, %v884_v1, %v863_v58 }
0x1526   :  { %v888_v62 = vcombine.low %v882_v4, %v885_v61 }
0x1527   :  { %v906_v63 = vpop.permute.xlu1 %905 }
0x1528   :  { %949 = vst.sshfl [vmem:[%s1461_s4] sm:$0x33 pattern:$0x76325410] %v888_v62  ;;  %908 = vst.msk [vmem:[#allocation4] sm:$0x3] %vm902_vm5, %v906_v63 }
0x1529   :  { %1144 = shalt.err (!%p1141_p4)
}
0x152a   :  { %930 = dma.vmem_to_hbm [thread:$0]  %s928_s15, 32, %s1463_s6, [#allocation5]  }
0x152b   :  { %s1183_s20 = smov [#allocation2]  }
0x152c   :  { %s917_s21 = sshll.u32 %s1183_s20, 4  ;;  %s918_s21 = int_to_ptr.vmem [resolvable:$true] %s917_s21 }
0x152d   :  { %s1153_s4 = scalar_lea.vmem %s918_s21, 32  ;;  %p1158_p6 = scmp.lt.s32.totalorder %s918_s21, %s918_s21 }
0x152e   :  { %p1154_p5 = scmp.ne.s32.totalorder %s918_s21, %s1153_s4  ;;  %p1159_p7 = scmp.lt.s32.totalorder %s1153_s4, %s1153_s4 }
0x1530   :  { %p1160_p8 = por %p1159_p7, %p1158_p6 }
0x1532   :  { %p1161_p9 = pnand %p1160_p8, %p1154_p5 }
0x1590   :  { %v900_v28 = vpop.permute.xlu0 %899 }
0x1591   :  { %903 = vst.msk [vmem:[#allocation2] sm:$0x3] %vm902_vm5, %v900_v28 }
0x1592   :  { %1164 = shalt.err (!%p1161_p9)
}
0x1593   :  { %920 = dma.vmem_to_hbm [thread:$0]  %s918_s21, 32, %s1462_s5, [#allocation3]  }
0x1594   :  { %1173 = dma.done.wait [#allocation3], 32  }
0x1595   :  { %1174 = vsyncadd [#allocation3], 4294967264 }
0x1596   :  { %1175 = dma.done.wait [#allocation5], 32  }
0x1597   :  { %1176 = vsyncadd [#allocation5], 4294967264 }
0x1598   :  { %939 = vsyncpa [#allocation3], 1 }
0x1599   :  { %940 = vsyncpa [#allocation5], 1 }

</bundles_post_ra>
